<compile_context>
chip_gen: v7x
topology: tpu7x:2x2x1
jax: 0.10.0
libtpu: 0.0.40
codegen_flags: <defaults>
</compile_context>

<pallas_src>
import functools

import jax
import jax.numpy as jnp
from jax.experimental import pallas as pl
from jax.experimental.pallas import tpu as pltpu


def _round_up(x, m):
    return (x + m - 1) // m * m


def _cdiv(a, b):
    return (a + b - 1) // b


def patch_embed_kernel(p_ref, w_ref, b_ref, o_ref):
    # p_ref: (tm, K_pad) bf16 patch rows; w_ref: (K_pad, E) bf16 (VMEM-resident, single
    # buffered); b_ref: (1, E) f32; o_ref: (tm, E) out_dtype. f32 accumulation on the MXU.
    acc = jnp.dot(p_ref[...], w_ref[...], preferred_element_type=jnp.float32)
    o_ref[...] = (acc + b_ref[...]).astype(o_ref.dtype)


def prepare_patch_embedding_params(weight, bias, compute_dtype=jnp.bfloat16):
    """One-time (module-init) prep: Conv2d weight (E,C,P,P) -> GEMM weight (K_pad,E).
    Hoisted out of the per-call path so the transpose+cast is not repeated every forward."""
    E = weight.shape[0]
    K = weight.shape[1] * weight.shape[2] * weight.shape[3]
    K_pad = _round_up(K, 128)
    w_mat = weight.reshape(E, K).T.astype(compute_dtype)        # (K, E)
    if K_pad != K:
        w_mat = jnp.pad(w_mat, ((0, K_pad - K), (0, 0)))        # zero rows: numerically exact
    b_row = bias.reshape(1, E).astype(jnp.float32)
    return w_mat, b_row


@functools.partial(jax.jit, static_argnames=("patch_size", "tm", "out_dtype"))
def patch_embedding(x, w_mat, b_row, *, patch_size, tm=512, out_dtype=None):
    """x: (B, C, H, W). w_mat: (K_pad, E) prepped GEMM weight. b_row: (1, E) f32 bias.
    Returns (B, num_patches, E), matching the PyTorch module's forward."""
    B, C, H, W = x.shape
    P = patch_size
    K_pad, E = w_mat.shape
    K = C * P * P
    assert H % P == 0 and W % P == 0, "spatial dims must be divisible by patch_size"
    assert K_pad == _round_up(K, 128), "w_mat does not match x's channel/patch geometry"
    Hp, Wp = H // P, W // P
    N = B * Hp * Wp
    out_dtype = x.dtype if out_dtype is None else out_dtype

    # --- im2col (wrapper-side layout plumbing). Cast to bf16 FIRST so the transpose moves
    #     half the bytes; (c, ph, pw) flatten order matches the weight reshape. ---
    patches = x.astype(w_mat.dtype)
    patches = patches.reshape(B, C, Hp, P, Wp, P)
    patches = patches.transpose(0, 2, 4, 1, 3, 5)               # (B, Hp, Wp, C, P, P)
    patches = patches.reshape(N, K)
    if K_pad != K:
        patches = jnp.pad(patches, ((0, 0), (0, K_pad - K)))    # lane-dense K (demo only)

    # --- token-axis tiling: ragged last block, no N padding. For small N keep >=2 tiles
    #     so the "parallel" axis can shard across v7x's 2 TensorCores. ---
    if N >= tm:
        tm_eff = tm
    else:
        tm_eff = max(16, _round_up(_cdiv(N, 2), 16))
    grid = (_cdiv(N, tm_eff),)

    # Per-step VMEM estimate (double-buffered streamed operands, single-buffered weight),
    # with 2x headroom; covers v5e's 16 MiB default scoped VMEM at large tm, capped for v7x.
    vmem_bytes = (2 * tm_eff * K_pad * w_mat.dtype.itemsize      # patch tiles (x2 buffers)
                  + K_pad * E * w_mat.dtype.itemsize             # weight (Buffered(1))
                  + 8 * 128 * 4                                  # bias tile (padded)
                  + 2 * tm_eff * E * jnp.dtype(out_dtype).itemsize)  # output tiles (x2)
    vmem_limit = int(min(max(2 * vmem_bytes, 32 << 20), 64 << 20))

    const = lambda i: (0, 0)

    out = pl.pallas_call(
        patch_embed_kernel,
        out_shape=jax.ShapeDtypeStruct((N, E), out_dtype),
        grid_spec=pltpu.PrefetchScalarGridSpec(
            num_scalar_prefetch=0,
            grid=grid,
            in_specs=[
                pl.BlockSpec((tm_eff, K_pad), lambda i: (i, 0)),            # streamed rows
                pl.BlockSpec((K_pad, E), const, pipeline_mode=pl.Buffered(1)),  # weight
                pl.BlockSpec((1, E), const, pipeline_mode=pl.Buffered(1)),      # bias
            ],
            out_specs=pl.BlockSpec((tm_eff, E), lambda i: (i, 0)),
        ),
        compiler_params=pltpu.CompilerParams(
            dimension_semantics=("parallel",),
            vmem_limit_bytes=vmem_limit,
        ),
    )(patches, w_mat, b_row)

    return out.reshape(B, Hp * Wp, E)


def reference(x, weight, bias, patch_size):
    """Exact conv (stride = kernel = P, no padding) + flatten + permute, forced f32."""
    y = jax.lax.conv_general_dilated(
        x.astype(jnp.float32), weight.astype(jnp.float32),
        window_strides=(patch_size, patch_size), padding="VALID",
        dimension_numbers=("NCHW", "OIHW", "NCHW"),
        precision=jax.lax.Precision.HIGHEST)
    y = y + bias.reshape(1, -1, 1, 1).astype(jnp.float32)
    Bc, Ec, Hp, Wp = y.shape
    return y.reshape(Bc, Ec, Hp * Wp).transpose(0, 2, 1)


if __name__ == "__main__":
    # Small shapes consistent with the module: (B, C, H, W) image, patch_size P, embedding E.
    B, C, H, W = 2, 4, 16, 16
    P = 4
    E = 128                       # lane-dense embedding dim (multiple of 128)
    K = C * P * P

    key = jax.random.PRNGKey(0)
    kx, kw, kb, kx2 = jax.random.split(key, 4)
    x = jax.random.normal(kx, (B, C, H, W), dtype=jnp.float32)
    weight = jax.random.normal(kw, (E, C, P, P), dtype=jnp.float32) * (1.0 / jnp.sqrt(K))
    bias = 0.01 * jax.random.normal(kb, (E,), dtype=jnp.float32)

    # Module-init-time weight prep (hoisted out of the per-call jitted path).
    w_mat, b_row = prepare_patch_embedding_params(weight, bias)

    y = patch_embedding(x, w_mat, b_row, patch_size=P)
    y = jax.block_until_ready(y)

    n_patches = (H // P) * (W // P)
    assert y.shape == (B, n_patches, E)

    # Tight check against a reference with identically bf16-rounded operands (isolates
    # kernel mechanics from the intentional bf16-operand approximation)...
    x_r = x.astype(jnp.bfloat16).astype(jnp.float32)
    w_r = weight.astype(jnp.bfloat16).astype(jnp.float32)
    y_ref_bf16ops = reference(x_r, w_r, bias, P)
    assert jnp.allclose(y, y_ref_bf16ops, atol=2e-3, rtol=2e-3), "mismatch vs bf16-operand reference"

    # ...and a loose sanity check against the pure-f32 conv reference.
    y_ref = reference(x, weight, bias, P)
    assert jnp.allclose(y, y_ref, atol=5e-2, rtol=5e-2), "mismatch vs f32 reference"

    # Ragged token count (N = 3*5*5 = 75, not a tile multiple) exercises the no-pad path.
    x2 = jax.random.normal(kx2, (3, C, 20, 20), dtype=jnp.float32)
    y2 = jax.block_until_ready(patch_embedding(x2, w_mat, b_row, patch_size=P))
    y2_ref = reference(x2.astype(jnp.bfloat16).astype(jnp.float32), w_r, bias, P)
    assert y2.shape == (3, 25, E)
    assert jnp.allclose(y2, y2_ref, atol=2e-3, rtol=2e-3), "mismatch on ragged-N case"

    # bf16 output path (what downstream bf16 ViT blocks would consume).
    y_bf16 = jax.block_until_ready(
        patch_embedding(x, w_mat, b_row, patch_size=P, out_dtype=jnp.bfloat16))
    assert y_bf16.dtype == jnp.bfloat16
    assert jnp.allclose(y_bf16.astype(jnp.float32), y_ref_bf16ops, atol=3e-2, rtol=2e-2), \
        "mismatch on bf16-output case"

    print("KERNEL_OK")
</pallas_src>

<mosaic_0001>
module attributes {stable_mosaic.version = 11 : i64} {
  func.func @patch_embed_kernel(%arg0: i32, %arg1: memref<16x128xbf16, #tpu.memory_space<vmem>>, %arg2: memref<128x128xbf16, #tpu.memory_space<vmem>>, %arg3: memref<1x128xf32, #tpu.memory_space<vmem>>, %arg4: memref<16x128xf32, #tpu.memory_space<vmem>>) attributes {dimension_semantics = [#tpu.dimension_semantics<parallel>], iteration_bounds = array<i64: 2>, scalar_prefetch = 0 : i64, scratch_operands = 0 : i64, tpu.core_type = #tpu.core_type<tc>, window_params = [{transform_indices = @transform_0, window_bounds = array<i64: 16, 128>}, {pipeline_mode = #tpu.pipeline_mode<synchronous>, transform_indices = @transform_1, window_bounds = array<i64: 128, 128>}, {pipeline_mode = #tpu.pipeline_mode<synchronous>, transform_indices = @transform_2, window_bounds = array<i64: 1, 128>}, {transform_indices = @transform_3, window_bounds = array<i64: 16, 128>}]} {
    %c0 = arith.constant 0 : index
    %c0_0 = arith.constant 0 : index
    %0 = vector.load %arg1[%c0, %c0_0] : memref<16x128xbf16, #tpu.memory_space<vmem>>, vector<16x128xbf16>
    %c0_1 = arith.constant 0 : index
    %c0_2 = arith.constant 0 : index
    %1 = vector.load %arg2[%c0_1, %c0_2] : memref<128x128xbf16, #tpu.memory_space<vmem>>, vector<128x128xbf16>
    %cst = arith.constant dense<0.000000e+00> : vector<16x128xf32>
    %2 = tpu.matmul %0, %1, %cst {dimension_numbers = #tpu.dot_dimension_numbers<[1], [0], [0], [1], [0, 0, 1, 1], [], []>} : vector<16x128xbf16>, vector<128x128xbf16>, vector<16x128xf32> -> vector<16x128xf32>
    %c0_3 = arith.constant 0 : index
    %c0_4 = arith.constant 0 : index
    %3 = vector.load %arg3[%c0_3, %c0_4] : memref<1x128xf32, #tpu.memory_space<vmem>>, vector<1x128xf32>
    %4 = vector.broadcast %3 : vector<1x128xf32> to vector<16x128xf32>
    %5 = arith.addf %2, %4 : vector<16x128xf32>
    %c0_5 = arith.constant 0 : index
    %c0_6 = arith.constant 0 : index
    %6 = vector.load %arg4[%c0_5, %c0_6] : memref<16x128xf32, #tpu.memory_space<vmem>>, vector<16x128xf32>
    tpu.vector_store %arg4[%c0_5, %c0_6], %5 {strides = array<i32>} : memref<16x128xf32, #tpu.memory_space<vmem>>, vector<16x128xf32>,
    return
  }
  func.func @transform_0(%arg0: i32) -> (i32, i32) {
    %c0_i32 = arith.constant 0 : i32
    %c0_i32_0 = arith.constant 0 : i32
    return %arg0, %c0_i32 : i32, i32
  }
  func.func @transform_1(%arg0: i32) -> (i32, i32) {
    %c0_i32 = arith.constant 0 : i32
    %c0_i32_0 = arith.constant 0 : i32
    %c0_i32_1 = arith.constant 0 : i32
    return %c0_i32, %c0_i32_0 : i32, i32
  }
  func.func @transform_2(%arg0: i32) -> (i32, i32) {
    %c0_i32 = arith.constant 0 : i32
    %c0_i32_0 = arith.constant 0 : i32
    %c0_i32_1 = arith.constant 0 : i32
    return %c0_i32, %c0_i32_0 : i32, i32
  }
  func.func @transform_3(%arg0: i32) -> (i32, i32) {
    %c0_i32 = arith.constant 0 : i32
    %c0_i32_0 = arith.constant 0 : i32
    return %arg0, %c0_i32 : i32, i32
  }
}

</mosaic_0001>

<bundles_post_ra>
// kernel: patch_embedding.1
= control target key start
LH: loop header
LB: loop body
LE: loop exit
PB: predicated region body
PF: predicated region fallthrough
CT: control target
= control target key end

     0   :  { %8 = vsyncpa [#allocation3], 0  ;;  %s693_s0 = inlined_call_operand.vmem [shape: bf16[32,128], index: 0, kind: input, shape index: {}]   ;;  %s694_s1 = inlined_call_operand.vmem [shape: bf16[128,128], index: 1, kind: input, shape index: {}]   ;;  %s695_s2 = inlined_call_operand.vmem [shape: f32[1,128], index: 2, kind: input, shape index: {}]   ;;  %s696_s3 = inlined_call_operand.hbm [shape: f32[32,128], index: 3, kind: output, shape index: {}]  }
   0x1   :  { %10 = vsyncpa [#allocation3 + $0x1], 0  ;;  %s564_s12 = smov 0   ;;  %s566_s13 = smov 0  }
   0x2   :  { %s568_s14 = smov 0   ;;  %s570_s15 = smov 0  }
   0x3 LB: > { %s585_s16 = sadd.s32 4294967295, %s537_s15   ;;  %s371_s17 = sadd.s32 4294967294, %s537_s15   ;;  %s537_s15 = sphi %s570_s15, %s702_s15   ;;  %s533_s14 = sphi %s568_s14, %s701_s14   ;;  %s529_s13 = sphi %s566_s13, %s700_s13   ;;  %s525_s12 = sphi %s564_s12, %s699_s12  }
   0x4   : > { %s589_s18 = sadd.s32 1, %s537_s15   ;;  %s91_s19 = sadd.s32 1, %s533_s14 }
   0x5   : > { %s88_s20 = ssub.s32 %s537_s15, %s589_s18  ;;  %p101_p0 = scmp.ne.s32.totalorder %s533_s14, %s529_s13 }
   0x6   : > { %p89_p1 = scmp.eq.s32.totalorder %s88_s20, 0  ;;  %p102_p2 = scmp.eq.s32.totalorder %s585_s16, 1 }
   0x7   : > { %p107_p3 = scmp.ne.s32.totalorder %s529_s13, %s525_s12  ;;  %p108_p4 = scmp.eq.s32.totalorder %s371_s17, 1 }
   0x8   : > { %s600_s21 = scalar_select %p89_p1, %s533_s14, %s91_s19  }
   0x9   : > { %p602_p5 = por %p102_p2, %p101_p0  ;;  %p606_p6 = por %p108_p4, %p107_p3 }
   0xa   : > { %p374_p7 = scmp.ge.s32.totalorder %s537_s15, 1  ;;  %p141_p8 = scmp.lt.s32.totalorder %s537_s15, 3 }
   0xc   : > { %p142_p9 = pnand %p374_p7, %p141_p8 }
   0xd   : > { %v466_v0 = vld [vmem:[%s694_s1] sm:$0xff] (!%p142_p9)   ;;  %v539_v1 = vmov (!%p142_p9), 0.0   ;;  %v467_v2 = vld [vmem:[%s694_s1 + $0x8] sm:$0xff] (!%p142_p9)   ;;  %vm540_vm0 = vmmov (!%p142_p9), 0   ;;  %s376_s28 = sshll.u32 (!%p142_p9), %s585_s16, 1  ;;  %v468_v3 = vld [vmem:[%s694_s1 + $0x10] sm:$0xff] (!%p142_p9)  }
   0xe   : > { %145 = sbr.rel (%p142_p9) target bundleno = 277 (0x115), region = 32  ;;  %403 = vmatprep.subr.bf16.mxu0 (!%p142_p9), %v539_v1  ;;  %419 = vmatprep.mubr.msk.bf16.mxu0 (!%p142_p9), %vm540_vm0, %v539_v1  ;;  %p166_p10 = scmp.lt.s32.totalorder (!%p142_p9), %s376_s28, 3  ;;  %v469_v4 = vld [vmem:[%s694_s1 + $0x18] sm:$0xff] (!%p142_p9)   ;;  %v470_v5 = vld [vmem:[%s694_s1 + $0x20] sm:$0xff] (!%p142_p9)   ;;  %v471_v6 = vld [vmem:[%s694_s1 + $0x28] sm:$0xff] (!%p142_p9)  }
   0xf   : > { %404 = vmatpush3.bf16.msra.mxu0 (!%p142_p9), %v466_v0  ;;  %v472_v7 = vld [vmem:[%s694_s1 + $0x30] sm:$0xff] (!%p142_p9)   ;;  %v473_v8 = vld [vmem:[%s694_s1 + $0x38] sm:$0xff] (!%p142_p9)   ;;  %s162_s27 = sand.u32 (!%p142_p9), 1, %s529_s13   ;;  %v378_v10 = vld [vmem:[%s695_s2] ss:$0 sm:$0xff] (!%p142_p9)  ;;  %s393_s6 = sshll.u32 (!%p142_p9), %s585_s16, 8 }
  0x10   : > { %405 = vmatprep.subr.bf16.mxu0 (!%p142_p9), %v539_v1  ;;  %s650_s9 = scalar_lea.hbm (!%p142_p9), %s696_s3, %s393_s6  ;;  %s652_s10 = scalar_lea.sflag (!%p142_p9), [#allocation3], %s162_s27 }
  0x11   : > { %s541_s11 = smov (!%p142_p9), [#allocation2]  }
  0x12   : > { %s479_s17 = sshll.u32 (!%p142_p9), %s541_s11, 4  ;;  %s480_s17 = int_to_ptr.vmem [resolvable:$false] %s479_s17 }
  0x13   : > { %406 = vmatpush3.bf16.msra.mxu0 (!%p142_p9), %v467_v2  ;;  %s481_s19 = scalar_lea.vmem (!%p142_p9), %s480_s17, 512 }
  0x14   : > { %407 = vmatprep.subr.bf16.mxu0 (!%p142_p9), %v539_v1 }
  0x15   : > { %s704_s28 = smov (!%p166_p10, %s376_s28), 3 }
  0x16   : > { %s377_s4 = sshll.u32 %s704_s28, 2  ;;  %s375_s28 = sshll.u32 %s162_s27, 4 }
  0x17   : > { %s169_s7 = scalar_lea.vmem %s693_s0, %s377_s4  ;;  %408 = vmatpush3.bf16.msra.mxu0 %v468_v3  ;;  %s164_s4 = scalar_lea.vmem [#allocation2], %s375_s28 }
  0x18   : > { %409 = vmatprep.subr.bf16.mxu0 %v539_v1  ;;  %v474_v9 = vld [vmem:[%s169_s7] sm:$0xff]   ;;  %s309_s5 = sshll.u32 %s164_s4, 4  ;;  %s645_s5 = int_to_ptr.vmem [resolvable:$true] %s309_s5 }
  0x19   : > { %s475_s16 = scalar_lea.vmem %s645_s5, 256  ;;  %p482_p0 = scmp.lt.s32.totalorder %s645_s5, %s480_s17 }
  0x1a   : > { %p476_p11 = scmp.ne.s32.totalorder %s645_s5, %s475_s16  ;;  %p483_p1 = scmp.lt.s32.totalorder %s481_s19, %s475_s16 }
  0x1b   : > { %410 = vmatpush3.bf16.msra.mxu0 %v469_v4 }
  0x1c   : > { %411 = vmatprep.subr.bf16.mxu0 %v539_v1  ;;  %p477_p12 = pnand %p476_p11, %p602_p5  ;;  %p484_p2 = por %p483_p1, %p482_p0 }
  0x1e   : > { %p478_p13 = pneg %p477_p12 }
  0x1f   : > { %412 = vmatpush3.bf16.msra.mxu0 %v470_v5 }
  0x20   : > { %413 = vmatprep.subr.bf16.mxu0 %v539_v1  ;;  %p485_p3 = pnand %p484_p2, %p478_p13 }
  0x23   : > { %414 = vmatpush3.bf16.msra.mxu0 %v471_v6 }
  0x24   : > { %415 = vmatprep.subr.bf16.mxu0 %v539_v1 }
  0x27   : > { %416 = vmatpush3.bf16.msra.mxu0 %v472_v7 }
  0x28   : > { %417 = vmatprep.subr.bf16.mxu0 %v539_v1 }
  0x2b   : > { %418 = vmatpush3.bf16.msra.mxu0 %v473_v8 }
  0x2e   : > { %420 = vmatmul.mubr.bf16.vlgmr.msra.gmra.mrb[0].mxu0 %v474_v9 }
 0x101   : > { %v286_v11 = vpop.f32.mrb[0].mxu0 }
 0x102   : > { %v287_v12 = vadd.f32 %v378_v10, %v286_v11  ;;  %v421_v13 = vpop.f32.mrb[1].mxu0 }
 0x103   : > { %v289_v14 = vpop.f32.mrb[2].mxu0 }
 0x104   : > { %293 = vst [vmem:[%s164_s4] sm:$0xff] %v287_v12  ;;  %v290_v15 = vadd.f32 %v378_v10, %v289_v14  ;;  %v422_v16 = vpop.f32.mrb[3].mxu0 }
 0x106   : > { %294 = vst [vmem:[%s164_s4 + $0x8] sm:$0xff] %v290_v15 }
 0x107   : > { %488 = shalt.err (!%p485_p3)
}
 0x108   : > { %s489_s20 = scalar_lea.hbm %s650_s9, 256  ;;  %s493_s26 = scalar_lea.hbm %s696_s3, 512 }
 0x109   : > { %p490_p4 = scmp.ne.s32.totalorder %s650_s9, %s489_s20  ;;  %p494_p9 = scmp.lt.u32.totalorder %s650_s9, %s696_s3 }
 0x10a   : > { %p495_p10 = scmp.lt.u32.totalorder %s493_s26, %s489_s20  ;;  %p497_p12 = scmp.lt.u32.totalorder %s489_s20, %s650_s9 }
 0x10b   : > { %p491_p7 = pnand %p490_p4, %p602_p5 }
 0x10c   : > { %p496_p11 = por %p495_p10, %p494_p9 }
 0x10d   : > { %p492_p8 = pneg %p491_p7 }
 0x10e   : > { %p498_p13 = por %p497_p12, %p496_p11 }
 0x110   : > { %p499_p0 = pnand %p498_p13, %p492_p8 }
 0x112   : > { %502 = shalt.err (!%p499_p0)
}
 0x113   : > { %s542_s29 = smov 128   ;;  %s543_s30 = smov 8  }
 0x114   : > { %423 = dma.vmem_to_hbm [thread:$0]  (%p602_p5), %s645_s5, 256, %s650_s9, %s652_s10, %s542_s29, %s542_s29, %s543_s30  }
 0x115 PF: > { %p429_p1 = scmp.ge.s32.totalorder %s537_s15, 2  ;;  %s324_s4 = sand.u32 1, %s525_s12  }
 0x116   : > { %s325_s6 = scalar_lea.sflag [#allocation3], %s324_s4 }
 0x117   : > { %p426_p2 = pnand %p429_p1, %p606_p6 }
 0x119   : > { %520 = dma.done.wait (!%p426_p2), %s325_s6, 256  }
 0x11a   : > { %522 = vsyncadd (!%p426_p2), %s325_s6, 4294967040  ;;  %p13_p3 = scmp.ge.s32.totalorder %s589_s18, 4   ;;  %s699_s12 = smov %s529_s13 }
 0x11b   : > { %s700_s13 = smov %s533_s14  ;;  %s701_s14 = smov %s600_s21 }
 0x11c   : > { %s702_s15 = smov %s589_s18  ;;  %15 = sbr.rel (!%p13_p3) target bundleno = 3 (0x3), region = 67 }
 0x123   :  { %330 = vsyncpa [#allocation3], 1 }
 0x124   :  { %332 = vsyncpa [#allocation3 + $0x1], 1 }

</bundles_post_ra>
